<compile_context>
chip_gen: v7x
topology: tpu7x:2x2x1
jax: 0.10.0
libtpu: 0.0.40
codegen_flags: <defaults>
</compile_context>

<pallas_src>
import functools

import jax
import jax.numpy as jnp
from jax.experimental import pallas as pl
from jax.experimental.pallas import tpu as pltpu

HIDDEN = 64  # mid_layer_out_features in the PyTorch module

# Row offsets inside the batch-independent packed parameter slab (64 lanes).
_ROW_WF = 0                 # 4 rows : [Wa ; Wb]  (folded W1, see pack_params)
_ROW_B1 = 4                 # 1 row  : b1
_ROW_W2 = 8                 # 64 rows: W2 (sublane-aligned start)
_ROW_B2 = _ROW_W2 + HIDDEN  # 1 row  : b2
_ROW_BV = _ROW_B2 + 1       # 1 row  : bv in column 0
_SLAB_ROWS = _ROW_BV + 1    # 74 rows total


def critic_kernel(v_ref, g_ref, p_ref, aux_ref, out_ref, *, batch, time_steps):
    """Fused critic forward.

    v_ref  : (B*T, 2)  f32 VMEM   velocity, flattened over (B, T)
    g_ref  : (B*T, 2)  f32 VMEM   goal, flattened over (B, T)
    p_ref  : (74, 64)  f32 VMEM   batch-independent parameter slab
    aux_ref: (2*B*T, 64) f32 VMEM batch-dependent aux (tiled Wv + selector)
    out_ref: (1, B)    f32 VMEM   critic value, batch on the lane axis
    """
    bt = batch * time_steps

    v = v_ref[...]                                    # (B*T, 2)
    g = g_ref[...]                                    # (B*T, 2)

    # Static slices of the packed parameter slab (zero-cost ref views -> loads).
    wf = p_ref[_ROW_WF:_ROW_WF + 4, :]                # (4, 64) folded W1
    b1 = p_ref[_ROW_B1:_ROW_B1 + 1, :]                # (1, 64)
    w2 = p_ref[_ROW_W2:_ROW_W2 + HIDDEN, :]           # (64, 64)
    b2 = p_ref[_ROW_B2:_ROW_B2 + 1, :]                # (1, 64)
    bv = p_ref[_ROW_BV:_ROW_BV + 1, 0:1]              # (1, 1)

    wvt = aux_ref[0:bt, :]                            # (B*T, 64) Wv tiled over B
    sel = aux_ref[bt:2 * bt, :]                       # (B*T, 64) 0/1 selector
                                                      #   sel[b*T+t, b] = 1

    # --- hidden_layer1 + ReLU: one small MXU matmul -----------------------------
    # concat([v, g - v]) @ W1 folded into [Wa ; Wb]; x4 = [v | g] feeds it directly.
    x4 = jnp.concatenate([v, g], axis=-1)             # (B*T, 4)
    h1 = jnp.dot(x4, wf, preferred_element_type=jnp.float32) + b1
    h1 = jnp.maximum(h1, 0.0)                         # (B*T, 64)

    # --- hidden_layer2 + ReLU: one plain 2D MXU matmul --------------------------
    h2 = jnp.dot(h1, w2, preferred_element_type=jnp.float32) + b2
    h2 = jnp.maximum(h2, 0.0)                         # (B*T, 64)

    # --- value head (O(B), no dense selector matmul) ----------------------------
    # flatten(start_dim=1) @ Wv  ==  sum_{t,k} h2[b,t,k] * Wv[t,k]:
    #   lane-reduce the weighted activations to one scalar per row, scatter the
    #   per-row scalars into their batch column via the precomputed 0/1 selector,
    #   sublane-reduce to a lane-dense (1, B) row.
    m = h2 * wvt                                      # (B*T, 64)
    row = jnp.sum(m, axis=1, keepdims=True)           # (B*T, 1)   XLU lane reduce
    vals = jnp.sum(row * sel, axis=0, keepdims=True)  # (1, 64)    sublane reduce

    out_ref[...] = (vals[:, 0:batch] + bv).astype(out_ref.dtype)


def pack_params(params):
    """One-time, batch-independent packing of all parameters into a f32 slab.

    Slab layout (74 rows x 64 lanes):
      [0:2]    Wa = W1[:2] - W1[2:]   (concat fold)
      [2:4]    Wb = W1[2:]
      [4:5]    b1
      [5:8]    zero padding (aligns W2 to a sublane-tile boundary)
      [8:72]   W2
      [72:73]  b2
      [73:74]  bv in column 0
    """
    w1, b1, w2, b2, _wv, bv = params
    wa = w1[0:2] - w1[2:4]
    wb = w1[2:4]
    pad = jnp.zeros((_ROW_W2 - (_ROW_B1 + 1), HIDDEN), jnp.float32)
    bv_row = jnp.zeros((1, HIDDEN), jnp.float32).at[0, 0].set(bv[0, 0])
    slab = jnp.concatenate([wa, wb, b1, pad, w2, b2, bv_row], axis=0)
    assert slab.shape == (_SLAB_ROWS, HIDDEN), slab.shape
    return slab


def pack_batch_aux(params, batch, time_steps):
    """Batch-dependent aux operand (built once per batch size, tiny).

    Rows [0:B*T]      : Wv tiled over the batch dim (Wv is the torch
                        Linear(64*T, 1) weight reshaped to (T, 64) — a reshape,
                        NOT a transpose, matching torch.flatten(start_dim=1)).
    Rows [B*T:2*B*T]  : 0/1 selector, sel[b*T+t, b] = 1 (requires B <= 64).
    """
    _w1, _b1, _w2, _b2, wv, _bv = params
    bt = batch * time_steps
    assert batch <= HIDDEN, "selector packing assumes B <= 64"
    # TODO(synk): for B > 64, ship the selector as its own (B*T, B) operand and
    # block it along the batch grid together with the activations.
    wvt = jnp.tile(wv, (batch, 1))                                    # (B*T, 64)
    rows = jnp.arange(bt, dtype=jnp.int32) // time_steps              # batch id per row
    cols = jnp.arange(HIDDEN, dtype=jnp.int32)
    sel = (rows[:, None] == cols[None, :]).astype(jnp.float32)        # (B*T, 64)
    return jnp.concatenate([wvt, sel], axis=0)                        # (2*B*T, 64)


def critic_forward(velocity, goal, param_slab, batch_aux, time_steps):
    """Wrapper: free (B,T,2)->(B*T,2) reshapes, then one fused pallas_call."""
    B = velocity.shape[0]
    v2d = velocity.reshape(B * time_steps, 2)
    g2d = goal.reshape(B * time_steps, 2)

    vmem = pl.BlockSpec(memory_space=pltpu.MemorySpace.VMEM)
    kernel = functools.partial(critic_kernel, batch=B, time_steps=time_steps)
    out_1b = pl.pallas_call(
        kernel,
        out_shape=jax.ShapeDtypeStruct((1, B), jnp.float32),
        in_specs=[vmem, vmem, vmem, vmem],
        out_specs=vmem,
    )(v2d, g2d, param_slab, batch_aux)
    return out_1b.reshape(B, 1)


def init_params(key, time_steps):
    """Deterministic synthetic init (shapes match the nn.Linear layers)."""
    k1, k2, k3 = jax.random.split(key, 3)
    w1 = jax.random.normal(k1, (4, HIDDEN), jnp.float32) * 0.1           # Linear(4, 64).weight.T
    b1 = jnp.zeros((1, HIDDEN), jnp.float32)
    w2 = jax.random.normal(k2, (HIDDEN, HIDDEN), jnp.float32) * 0.05     # Linear(64, 64).weight.T
    b2 = jnp.zeros((1, HIDDEN), jnp.float32)
    wv = jax.random.normal(k3, (time_steps, HIDDEN), jnp.float32) * 0.05 # Linear(64*T, 1).weight reshaped (T, 64)
    bv = jnp.zeros((1, 1), jnp.float32)
    return (w1, b1, w2, b2, wv, bv)


def critic_reference(velocity, goal, params):
    """Pure-JAX reference mirroring the PyTorch module exactly."""
    w1, b1, w2, b2, wv, bv = params
    x = jnp.concatenate([velocity, goal - velocity], axis=-1)
    h1 = jax.nn.relu(jnp.einsum("btf,fh->bth", x, w1) + b1[None])
    h2 = jax.nn.relu(jnp.einsum("bth,hk->btk", h1, w2) + b2[None])
    B = x.shape[0]
    flat = h2.reshape(B, -1)                     # (B, T*64) == torch.flatten(x, 1)
    return flat @ wv.reshape(-1, 1) + bv[0, 0]   # (B, 1)


if __name__ == "__main__":
    batch = 2
    time_steps = 8

    key = jax.random.PRNGKey(0)
    k_params, k_vel, k_goal = jax.random.split(key, 3)

    params = init_params(k_params, time_steps)
    velocity = jax.random.normal(k_vel, (batch, time_steps, 2), jnp.float32)
    goal = jax.random.normal(k_goal, (batch, time_steps, 2), jnp.float32)

    param_slab = pack_params(params)                       # batch-independent, packed once
    batch_aux = pack_batch_aux(params, batch, time_steps)  # tiny, once per batch size

    out = critic_forward(velocity, goal, param_slab, batch_aux, time_steps)
    out = jax.block_until_ready(out)

    ref = critic_reference(velocity, goal, params)
    assert out.shape == (batch, 1), out.shape
    assert jnp.allclose(out, ref, atol=1e-4, rtol=1e-4), (out, ref)

    print("KERNEL_OK")
</pallas_src>

<mosaic_0001>
module attributes {stable_mosaic.version = 11 : i64} {
  func.func @critic_kernel(%arg0: memref<16x2xf32, #tpu.memory_space<vmem>>, %arg1: memref<16x2xf32, #tpu.memory_space<vmem>>, %arg2: memref<74x64xf32, #tpu.memory_space<vmem>>, %arg3: memref<32x64xf32, #tpu.memory_space<vmem>>, %arg4: memref<1x2xf32, #tpu.memory_space<vmem>>) attributes {dimension_semantics = [], scalar_prefetch = 0 : i64, scratch_operands = 0 : i64, tpu.core_type = #tpu.core_type<tc>} {
    %c0 = arith.constant 0 : index
    %c0_0 = arith.constant 0 : index
    %0 = vector.load %arg0[%c0, %c0_0] : memref<16x2xf32, #tpu.memory_space<vmem>>, vector<16x2xf32>
    %c0_1 = arith.constant 0 : index
    %c0_2 = arith.constant 0 : index
    %1 = vector.load %arg1[%c0_1, %c0_2] : memref<16x2xf32, #tpu.memory_space<vmem>>, vector<16x2xf32>
    %c0_3 = arith.constant 0 : index
    %c0_4 = arith.constant 0 : index
    %2 = vector.load %arg2[%c0_3, %c0_4] : memref<74x64xf32, #tpu.memory_space<vmem>>, vector<4x64xf32>
    %c4 = arith.constant 4 : index
    %c0_5 = arith.constant 0 : index
    %3 = vector.load %arg2[%c4, %c0_5] : memref<74x64xf32, #tpu.memory_space<vmem>>, vector<1x64xf32>
    %c8 = arith.constant 8 : index
    %c0_6 = arith.constant 0 : index
    %4 = vector.load %arg2[%c8, %c0_6] : memref<74x64xf32, #tpu.memory_space<vmem>>, vector<64x64xf32>
    %c72 = arith.constant 72 : index
    %c0_7 = arith.constant 0 : index
    %5 = vector.load %arg2[%c72, %c0_7] : memref<74x64xf32, #tpu.memory_space<vmem>>, vector<1x64xf32>
    %c73 = arith.constant 73 : index
    %c0_8 = arith.constant 0 : index
    %6 = vector.load %arg2[%c73, %c0_8] : memref<74x64xf32, #tpu.memory_space<vmem>>, vector<1x1xf32>
    %c0_9 = arith.constant 0 : index
    %c0_10 = arith.constant 0 : index
    %7 = vector.load %arg3[%c0_9, %c0_10] : memref<32x64xf32, #tpu.memory_space<vmem>>, vector<16x64xf32>
    %c16 = arith.constant 16 : index
    %c0_11 = arith.constant 0 : index
    %8 = vector.load %arg3[%c16, %c0_11] : memref<32x64xf32, #tpu.memory_space<vmem>>, vector<16x64xf32>
    %9 = tpu.concatenate %0, %1 in 1 : vector<16x2xf32>, vector<16x2xf32> -> vector<16x4xf32>
    %cst = arith.constant dense<0.000000e+00> : vector<16x64xf32>
    %10 = tpu.matmul %9, %2, %cst {dimension_numbers = #tpu.dot_dimension_numbers<[1], [0], [0], [1], [0, 0, 1, 1], [], []>} : vector<16x4xf32>, vector<4x64xf32>, vector<16x64xf32> -> vector<16x64xf32>
    %11 = vector.broadcast %3 : vector<1x64xf32> to vector<16x64xf32>
    %12 = arith.addf %10, %11 : vector<16x64xf32>
    %cst_12 = arith.constant 0.000000e+00 : f32
    %13 = vector.broadcast %cst_12 : f32 to vector<16x64xf32>
    %14 = arith.maximumf %12, %13 : vector<16x64xf32>
    %cst_13 = arith.constant dense<0.000000e+00> : vector<16x64xf32>
    %15 = tpu.matmul %14, %4, %cst_13 {dimension_numbers = #tpu.dot_dimension_numbers<[1], [0], [0], [1], [0, 0, 1, 1], [], []>} : vector<16x64xf32>, vector<64x64xf32>, vector<16x64xf32> -> vector<16x64xf32>
    %16 = vector.broadcast %5 : vector<1x64xf32> to vector<16x64xf32>
    %17 = arith.addf %15, %16 : vector<16x64xf32>
    %cst_14 = arith.constant 0.000000e+00 : f32
    %18 = vector.broadcast %cst_14 : f32 to vector<16x64xf32>
    %19 = arith.maximumf %17, %18 : vector<16x64xf32>
    %20 = arith.mulf %19, %7 : vector<16x64xf32>
    %cst_15 = arith.constant dense<0.000000e+00> : vector<16xf32>
    %21 = vector.multi_reduction <add>, %20, %cst_15 [1] : vector<16x64xf32> to vector<16xf32>
    %22 = vector.shape_cast %21 : vector<16xf32> to vector<16x1xf32>
    %23 = vector.broadcast %22 : vector<16x1xf32> to vector<16x64xf32>
    %24 = arith.mulf %23, %8 : vector<16x64xf32>
    %cst_16 = arith.constant dense<0.000000e+00> : vector<64xf32>
    %25 = vector.multi_reduction <add>, %24, %cst_16 [0] : vector<16x64xf32> to vector<64xf32>
    %26 = vector.shape_cast %25 : vector<64xf32> to vector<1x64xf32>
    %27 = vector.extract_strided_slice %26 {offsets = [0, 0], sizes = [1, 2], strides = [1, 1]} : vector<1x64xf32> to vector<1x2xf32>
    %28 = vector.broadcast %6 : vector<1x1xf32> to vector<1x2xf32>
    %29 = arith.addf %27, %28 : vector<1x2xf32>
    %c0_17 = arith.constant 0 : index
    %c0_18 = arith.constant 0 : index
    %30 = vector.load %arg4[%c0_17, %c0_18] : memref<1x2xf32, #tpu.memory_space<vmem>>, vector<1x2xf32>
    tpu.vector_store %arg4[%c0_17, %c0_18], %29 {strides = array<i32>} : memref<1x2xf32, #tpu.memory_space<vmem>>, vector<1x2xf32>,
    return
  }
}

</mosaic_0001>

<bundles_post_ra>
// kernel: tpu_custom_call.1
= control target key start
LH: loop header
LB: loop body
LE: loop exit
PB: predicated region body
PF: predicated region fallthrough
CT: control target
= control target key end

     0   :  { %s358_s17 = smov 2   ;;  %vm60_vm0 = vcmask 1043456   ;;  %s464_s0 = inlined_call_operand.vmem [shape: f32[16,2], index: 0, kind: input, shape index: {}]   ;;  %s465_s1 = inlined_call_operand.vmem [shape: f32[16,2], index: 1, kind: input, shape index: {}]   ;;  %s466_s2 = inlined_call_operand.vmem [shape: f32[74,64], index: 2, kind: input, shape index: {}]   ;;  %s467_s3 = inlined_call_operand.vmem [shape: f32[32,64], index: 3, kind: input, shape index: {}]   ;;  %s468_s4 = inlined_call_operand.hbm [shape: f32[1,2], index: 4, kind: output, shape index: {}]  }
   0x1   :  { %v20_v0 = vld [vmem:[%s465_s1] sm:$0xff]  ;;  %v21_v1 = vld [vmem:[%s465_s1 + $0x8] sm:$0xff]  ;;  %v25_v4 = vld [vmem:[%s466_s2 + $0x10] sm:$0xff] }
   0x2   :  { %40 = vrot.lane.b32.xlu0 %v20_v0, %s358_s17  ;;  %v22_v2 = vld [vmem:[%s466_s2] sm:$0xf]  ;;  %v24_v3 = vld [vmem:[%s466_s2 + $0x8] sm:$0xff]  ;;  %v26_v5 = vld [vmem:[%s466_s2 + $0x18] sm:$0xff] }
   0x3   :  { %290 = vmatprep.subr.msk.mxu0 %vm60_vm0, %v22_v2  ;;  %v27_v6 = vld [vmem:[%s466_s2 + $0x20] sm:$0xff]  ;;  %v314_v7 = vpack.c.bf16 %v25_v4, %v24_v3 }
   0x4   :  { %291 = vmatpush3.msk.msra.mxu0 %vm60_vm0, %v22_v2  ;;  %v318_v8 = vpack.c.bf16 %v27_v6, %v26_v5 }
   0x5   :  { %9 = vsyncpa [#allocation3], 0  ;;  %v28_v9 = vld [vmem:[%s466_s2 + $0x28] sm:$0xff]  ;;  %v29_v10 = vld [vmem:[%s466_s2 + $0x30] sm:$0xff]  ;;  %315 = vmatprep.subr.bf16.mxu1 %v314_v7  ;;  %vm46_vm1 = vcmask 15360   ;;  %vm53_vm2 = vcmask 31744  }
   0x6   :  { %42 = vrot.lane.b32.xlu0 %v21_v1, %s358_s17  ;;  %317 = vmatpush3.bf16.msra.mxu1 %v314_v7  ;;  %v322_v11 = vpack.c.bf16 %v29_v10, %v28_v9  ;;  %v18_v12 = vld [vmem:[%s464_s0] sm:$0xff]  ;;  %v19_v15 = vld [vmem:[%s464_s0 + $0x8] sm:$0xff]  ;;  %v30_v18 = vld [vmem:[%s466_s2 + $0x38] sm:$0xff]  ;;  %vm145_vm3 = vcmask 523264   ;;  %v359_v29 = vmov 0   ;;  %s360_s27 = smov [#allocation2]  }
   0x7   :  { %319 = vmatprep.subr.bf16.mxu1 %v318_v8  ;;  %v31_v19 = vld [vmem:[%s466_s2 + $0x40] sm:$0xff]  ;;  %v33_v28 = vld [vmem:[%s466_s2 + $0x49] sm:$0x1]  ;;  %333 = vset.pattern.permute.xlu0 %v359_v29  ;;  %v274_v30 = vld [vmem:[%s466_s2 + $0x48] ss:$0 sm:$0xff]  ;;  %s262_s28 = sshll.u32 %s360_s27, 4  ;;  %s263_s28 = int_to_ptr.vmem [resolvable:$true] %s262_s28 }
   0x8   :  { %v326_v20 = vpack.c.bf16 %v31_v19, %v30_v18  ;;  %v270_v21 = vld [vmem:[%s466_s2 + $0x4] ss:$0 sm:$0xff]  ;;  %v35_v38 = vld [vmem:[%s467_s3 + $0x8] sm:$0xff]  ;;  %v36_v43 = vld [vmem:[%s467_s3 + $0x10] sm:$0xff]  ;;  %vm254_vm4 = vcmask 8192   ;;  %s338_s1 = scalar_lea.vmem %s263_s28, 32  ;;  %p339_p1 = scmp.lt.s32.totalorder %s263_s28, %s263_s28 }
   0x9   :  { %v34_v35 = vld [vmem:[%s467_s3] sm:$0xff]  ;;  %v37_v45 = vld [vmem:[%s467_s3 + $0x18] sm:$0xff]  ;;  %s334_s3 = scalar_lea.vmem %s263_s28, 16 }
   0xa   :  { %321 = vmatpush3.bf16.msra.mxu1 %v318_v8  ;;  %250 = vperm.xlu0 %333, %v33_v28   ;;  %p335_p0 = scmp.ne.s32.totalorder %s263_s28, %s334_s3  ;;  %p340_p2 = scmp.lt.s32.totalorder %s338_s1, %s334_s3 }
   0xb   :  { %323 = vmatprep.subr.bf16.mxu1 %v322_v11 }
   0xc   :  { %p341_p3 = por %p340_p2, %p339_p1 }
   0xe   :  { %325 = vmatpush3.bf16.msra.mxu1 %v322_v11  ;;  %p342_p4 = pnand %p341_p3, %p335_p0 }
   0xf   :  { %327 = vmatprep.subr.bf16.mxu1 %v326_v20 }
  0x12   :  { %329 = vmatpush3.bf16.msra.mxu1 %v326_v20 }
  0x74   :  { %v41_v13 = vpop.permute.xlu0 %40 }
  0x75   :  { %v47_v14 = vsel %vm46_vm1, %v18_v12, %v41_v13 }
  0x76   :  { %292 = vmatprep.mubr.msk.f32.mxu0 %vm53_vm2, %v47_v14 }
  0x78   :  { %v43_v16 = vpop.permute.xlu0 %42 }
  0x79   :  { %v48_v17 = vsel %vm46_vm1, %v19_v15, %v43_v16 }
  0x7a   :  { %293 = vmatmul.mubr.msk.f32.vlgmr.msra.gmra.mrb[0].mxu0 %vm53_vm2, %v48_v17 }
  0x89   :  { %v251_v57 = vpop.permute.xlu0 %250 }
 0x14d   :  { %v294_v22 = vpop.f32.mrb[0].mxu0 }
 0x14e   :  { %v136_v23 = vadd.f32 %v294_v22, %v270_v21  ;;  %v130_v24 = vpop.f32.mrb[1].mxu0 }
 0x14f   :  { %v131_v25 = vadd.f32 %v270_v21, %v130_v24 }
 0x150   :  { %v140_v27 = vmax.f32 %v136_v23, 0.0 }
 0x151   :  { %v139_v26 = vmax.f32 %v131_v25, 0.0 }
 0x153   :  { %311 = vmatprep.mubr.msk.f32.mxu1 %vm145_vm3, %v139_v26 }
 0x154   :  { %312 = vmatmul.mubr.msk.f32.vlgmr.msra.gmra.mrb[0].mxu1 %vm145_vm3, %v140_v27 }
 0x227   :  { %v313_v31 = vpop.f32.mrb[0].mxu1 }
 0x228   :  { %v224_v32 = vadd.f32 %v313_v31, %v274_v30  ;;  %v218_v33 = vpop.f32.mrb[1].mxu1 }
 0x229   :  { %v219_v34 = vadd.f32 %v274_v30, %v218_v33 }
 0x22a   :  { %v228_v36 = vmax.f32 %v224_v32, 0.0 }
 0x22b   :  { %v227_v37 = vmax.f32 %v219_v34, 0.0 }
 0x22c   :  { %v230_v41 = vmul.f32 %v228_v36, %v35_v38 }
 0x22d   :  { %v229_v39 = vmul.f32 %v227_v37, %v34_v35 }
 0x22e   :  { %v234_v42 = vsel %vm145_vm3, %v230_v41, 0.0 }
 0x22f   :  { %v231_v40 = vsel %vm145_vm3, %v229_v39, 0.0 }
 0x230   :  { %232 = vadd.xlane.f32.xlu1 %v231_v40 }
 0x234   :  { %235 = vadd.xlane.f32.xlu1 %v234_v42 }
 0x2bd   :  { %v233_v44 = vpop.xlane.xlu1 %232 }
 0x2be   :  { %v237_v46 = vmul.f32 %v233_v44, %v36_v43 }
 0x2c0   :  { %v239_v49 = vsel %vm145_vm3, %v237_v46, 0.0 }
 0x2c1   :  { %v236_v47 = vpop.xlane.xlu1 %235 }
 0x2c2   :  { %v238_v48 = vmul.f32 %v236_v47, %v37_v45 }
 0x2c4   :  { %v240_v50 = vsel %vm145_vm3, %v238_v48, 0.0 }
 0x2c5   :  { %v241_v51 = vadd.f32 %v240_v50, %v239_v49 }
 0x2c7   :  { %v242_v52 = vrot.slane %v241_v51, 4 }
 0x2c9   :  { %v243_v53 = vadd.f32 %v242_v52, %v241_v51 }
 0x2cb   :  { %v244_v54 = vrot.slane %v243_v53, 2 }
 0x2cd   :  { %v245_v55 = vadd.f32 %v244_v54, %v243_v53 }
 0x2cf   :  { %v246_v56 = vrot.slane %v245_v55, 1 }
 0x2d1   :  { %v247_v58 = vadd.f32 %v246_v56, %v245_v55 }
 0x2d3   :  { %v253_v59 = vadd.f32 %v251_v57, %v247_v58 }
 0x2d5   :  { %255 = vst.msk [vmem:[#allocation2] sm:$0x1] %vm254_vm4, %v253_v59 }
 0x2d6   :  { %345 = shalt.err (!%p342_p4)
}
 0x2d7   :  { %s346_s5 = scalar_lea.hbm %s468_s4, 16 }
 0x2d8   :  { %p347_p5 = scmp.ne.s32.totalorder %s468_s4, %s346_s5  ;;  %p350_p6 = scmp.lt.u32.totalorder %s346_s5, %s468_s4 }
 0x2da   :  { %p352_p7 = pnand %p350_p6, %p347_p5 }
 0x2dc   :  { %355 = shalt.err (!%p352_p7)
}
 0x2dd   :  { %265 = dma.vmem_to_hbm [thread:$0]  %s263_s28, 16, %s468_s4, [#allocation3]  }
 0x2de   :  { %356 = dma.done.wait [#allocation3], 16  }
 0x2df   :  { %357 = vsyncadd [#allocation3], 4294967280 }
 0x2e0   :  { %269 = vsyncpa [#allocation3], 1 }

</bundles_post_ra>
